<compile_context>
chip_gen: v7x
topology: tpu7x:2x2x1
jax: 0.10.0
libtpu: 0.0.40
codegen_flags: <defaults>
</compile_context>

<pallas_src>
import math

import jax
import jax.numpy as jnp
from jax.experimental import pallas as pl
from jax.experimental.pallas import tpu as pltpu


def _scaling_kernel(x_ref, alpha_ref, o_ref):
    # x_ref: (TILE_R, TILE_L) tile; alpha_ref: (1, TILE_L) constant lane block.
    o_ref[...] = x_ref[...] * alpha_ref[...]


def _round_up(a, b):
    return (a + b - 1) // b * b


def _device_generation():
    try:
        kind = jax.devices()[0].device_kind.lower()
    except Exception:
        return "unknown"
    if "v7" in kind or "7x" in kind:
        return "v7"
    if "v6" in kind:
        return "v6"
    if "v5" in kind:
        return "v5"
    return "unknown"


def scaling_layer(x, alpha, *, init, scale,
                  target_tile_bytes=None,
                  min_pallas_bytes=256 << 10,
                  max_lane_fold=8192):
    """ScalingLayer forward: (alpha * init/scale) * x, with x shaped (..., d_model)."""
    orig_shape = x.shape
    assert x.ndim >= 2, "expected (..., d_model) input"
    d_model = orig_shape[-1]
    assert alpha.shape == (d_model,)

    # Fold the scalar (init/scale) factor into alpha once, wrapper-side.
    factor = float(init) / float(scale)
    alpha_scaled = (alpha.astype(jnp.float32) * factor).astype(x.dtype)

    total = x.size
    itemsize = jnp.dtype(x.dtype).itemsize

    # Tiny inputs: fixed pallas_call/DMA setup dominates and blocks XLA fusion
    # with neighbours; a plain JAX multiply is faster and fusible.
    if total * itemsize < min_pallas_bytes:
        return x * alpha_scaled

    gen = _device_generation()
    if target_tile_bytes is None:
        target_tile_bytes = {"v7": 6 << 20, "v6": 4 << 20, "v5": 2 << 20}.get(gen, 4 << 20)

    # ---- lane-dense layout --------------------------------------------------
    # Make the last (lane) axis a multiple of 128 so stores are unmasked full
    # vst's. If d_model already is, keep it; otherwise fold whole rows together
    # using lcm(d_model, 128) whenever the element count allows it.
    if d_model % 128 == 0:
        d_lane, reps = d_model, 1
    else:
        lcm = d_model * 128 // math.gcd(d_model, 128)
        if total % lcm == 0 and lcm <= max_lane_fold:
            d_lane, reps = lcm, lcm // d_model
        else:
            d_lane, reps = d_model, 1  # fallback: masked partial stores, still correct

    alpha_lane = alpha_scaled if reps == 1 else jnp.tile(alpha_scaled, reps)
    alpha_lane = alpha_lane.reshape(1, d_lane)

    rows = total // d_lane
    x2d = x.reshape(rows, d_lane)

    # ---- tiling -------------------------------------------------------------
    # Sublane packing multiple per dtype: f32 -> 8 rows, bf16 -> 16, int8/fp8 -> 32.
    pack = max(8, 32 // itemsize)

    # Lane-axis split guard: an extreme d_lane could exceed the VMEM budget even
    # with a minimal row tile; split into 128-multiple lane blocks dividing d_lane.
    tile_l = d_lane
    if d_lane % 128 == 0 and d_lane * pack * itemsize > target_tile_bytes:
        budget_l = max(128, (target_tile_bytes // (pack * itemsize)) // 128 * 128)
        tile_l = 128
        for cand in range(budget_l, 127, -128):
            if d_lane % cand == 0:
                tile_l = cand
                break

    # Row tile: as big as fits the byte budget, balanced so the last grid step
    # isn't nearly empty, and rounded to the sublane-packing multiple.
    row_bytes = tile_l * itemsize
    rows_per_tile = max(pack, (target_tile_bytes // row_bytes) // pack * pack)
    if rows_per_tile >= rows:
        tile_r = rows                          # full-extent block is always legal
    else:
        n_tiles = pl.cdiv(rows, rows_per_tile)
        tile_r = _round_up(pl.cdiv(rows, n_tiles), pack)
        tile_r = min(tile_r, rows)

    grid = (pl.cdiv(rows, tile_r), pl.cdiv(d_lane, tile_l))

    # ---- pipelining / VMEM budget -------------------------------------------
    n_in_buf = 3 if gen == "v7" else 2         # deeper input pipeline on v7x (short steps)
    tile_bytes = tile_r * tile_l * itemsize
    needed = (n_in_buf + 2) * tile_bytes + 2 * tile_l * itemsize
    vmem_limit = min(48 << 20, max(32 << 20, int(needed * 1.25) + (2 << 20)))

    x_spec = pl.BlockSpec((tile_r, tile_l), lambda i, j: (i, j))
    if n_in_buf > 2 and hasattr(pl, "Buffered"):
        try:
            x_spec = pl.BlockSpec((tile_r, tile_l), lambda i, j: (i, j),
                                  pipeline_mode=pl.Buffered(n_in_buf))
        except TypeError:
            pass  # older jax: keep default double buffering

    cost = pl.CostEstimate(
        flops=rows * d_lane,
        transcendentals=0,
        bytes_accessed=2 * rows * d_lane * itemsize + d_lane * itemsize,
    )

    # TODO(synk): on v7x, verify in an xprof trace that both TensorCores issue
    # DMAs; if not, switch the row axis to pltpu.CORE_PARALLEL (or pl.core_map).
    out2d = pl.pallas_call(
        _scaling_kernel,
        out_shape=jax.ShapeDtypeStruct((rows, d_lane), x.dtype),
        grid=grid,
        in_specs=[
            x_spec,
            pl.BlockSpec((1, tile_l), lambda i, j: (0, j)),
        ],
        out_specs=pl.BlockSpec((tile_r, tile_l), lambda i, j: (i, j)),
        compiler_params=pltpu.CompilerParams(
            dimension_semantics=("parallel", "parallel"),
            vmem_limit_bytes=vmem_limit,
        ),
        cost_estimate=cost,
    )(x2d, alpha_lane)

    return out2d.reshape(orig_shape)


if __name__ == "__main__":
    key = jax.random.PRNGKey(0)

    d_model = 32
    init = 1.0
    scale = 1.0 / (d_model ** 0.5)

    # Deterministic parameter matching nn.Parameter(torch.full((d_model,), scale)).
    alpha = jnp.full((d_model,), scale, dtype=jnp.float32)

    k1, k2, k3, k4 = jax.random.split(key, 4)

    # 3-D input: (batch, seq, d_model) -- force the Pallas path.
    x3 = jax.random.normal(k1, (2, 8, d_model), dtype=jnp.float32)
    out3 = scaling_layer(x3, alpha, init=init, scale=scale, min_pallas_bytes=0)
    jax.block_until_ready(out3)

    # 2-D input: (batch, d_model) -- force the Pallas path.
    x2 = jax.random.normal(k2, (4, d_model), dtype=jnp.float32)
    out2 = scaling_layer(x2, alpha, init=init, scale=scale, min_pallas_bytes=0)
    jax.block_until_ready(out2)

    # Larger 3-D input with a tiny tile budget to exercise the multi-tile grid
    # (balanced row tiles + padded trailing block).
    xb = jax.random.normal(k3, (10, 100, d_model), dtype=jnp.float32)
    outb = scaling_layer(xb, alpha, init=init, scale=scale,
                         target_tile_bytes=64 << 10, min_pallas_bytes=0)
    jax.block_until_ready(outb)

    # bf16 input with d_model=96: exercises the lcm(96,128)=384 lane-fold path
    # and the 16-row sublane-packing multiple.
    d96 = 96
    scale96 = 1.0 / (d96 ** 0.5)
    alpha96 = jnp.full((d96,), scale96, dtype=jnp.float32)
    xh = jax.random.normal(k4, (4, 64, d96), dtype=jnp.bfloat16)
    outh = scaling_layer(xh, alpha96, init=init, scale=scale96, min_pallas_bytes=0)
    jax.block_until_ready(outh)

    # Tiny-input bypass path (default threshold): pure-JAX multiply.
    out_tiny = scaling_layer(x2, alpha, init=init, scale=scale)
    jax.block_until_ready(out_tiny)

    # Reference checks (pure JAX).
    fac = init / scale
    ref3 = (alpha * fac)[None, None, :] * x3
    ref2 = (alpha * fac)[None, :] * x2
    refb = (alpha * fac)[None, None, :] * xb
    alpha96_scaled = (alpha96 * (init / scale96)).astype(jnp.bfloat16).astype(jnp.float32)
    refh = alpha96_scaled[None, None, :] * xh.astype(jnp.float32)

    assert jnp.allclose(out3, ref3, atol=1e-6), "3D mismatch"
    assert jnp.allclose(out2, ref2, atol=1e-6), "2D mismatch"
    assert jnp.allclose(outb, refb, atol=1e-6), "tiled-path mismatch"
    assert jnp.allclose(out_tiny, ref2, atol=1e-6), "bypass-path mismatch"
    assert jnp.allclose(outh.astype(jnp.float32), refh, atol=2e-2, rtol=2e-2), "bf16 lcm-path mismatch"

    print("KERNEL_OK")
</pallas_src>

<mosaic_0001>
module attributes {stable_mosaic.version = 11 : i64} {
  func.func @_scaling_kernel(%arg0: i32, %arg1: i32, %arg2: memref<4x128xf32, #tpu.memory_space<vmem>>, %arg3: memref<1x128xf32, #tpu.memory_space<vmem>>, %arg4: memref<4x128xf32, #tpu.memory_space<vmem>>) attributes {dimension_semantics = [#tpu.dimension_semantics<parallel>, #tpu.dimension_semantics<parallel>], iteration_bounds = array<i64: 1, 1>, scalar_prefetch = 0 : i64, scratch_operands = 0 : i64, tpu.core_type = #tpu.core_type<tc>, window_params = [{transform_indices = @transform_0, window_bounds = array<i64: 4, 128>}, {transform_indices = @transform_1, window_bounds = array<i64: 1, 128>}, {transform_indices = @transform_2, window_bounds = array<i64: 4, 128>}]} {
    %c0 = arith.constant 0 : index
    %c0_0 = arith.constant 0 : index
    %0 = vector.load %arg2[%c0, %c0_0] : memref<4x128xf32, #tpu.memory_space<vmem>>, vector<4x128xf32>
    %c0_1 = arith.constant 0 : index
    %c0_2 = arith.constant 0 : index
    %1 = vector.load %arg3[%c0_1, %c0_2] : memref<1x128xf32, #tpu.memory_space<vmem>>, vector<1x128xf32>
    %2 = vector.broadcast %1 : vector<1x128xf32> to vector<4x128xf32>
    %3 = arith.mulf %0, %2 : vector<4x128xf32>
    %c0_3 = arith.constant 0 : index
    %c0_4 = arith.constant 0 : index
    %4 = vector.load %arg4[%c0_3, %c0_4] : memref<4x128xf32, #tpu.memory_space<vmem>>, vector<4x128xf32>
    tpu.vector_store %arg4[%c0_3, %c0_4], %3 {strides = array<i32>} : memref<4x128xf32, #tpu.memory_space<vmem>>, vector<4x128xf32>,
    return
  }
  func.func @transform_0(%arg0: i32, %arg1: i32) -> (i32, i32) {
    %c0_i32 = arith.constant 0 : i32
    return %arg0, %arg1 : i32, i32
  }
  func.func @transform_1(%arg0: i32, %arg1: i32) -> (i32, i32) {
    %c0_i32 = arith.constant 0 : i32
    %c0_i32_0 = arith.constant 0 : i32
    return %c0_i32, %arg1 : i32, i32
  }
  func.func @transform_2(%arg0: i32, %arg1: i32) -> (i32, i32) {
    %c0_i32 = arith.constant 0 : i32
    return %arg0, %arg1 : i32, i32
  }
}

</mosaic_0001>

<bundles_post_ra>
// kernel: tpu_custom_call.1
= control target key start
LH: loop header
LB: loop body
LE: loop exit
PB: predicated region body
PF: predicated region fallthrough
CT: control target
= control target key end

     0   :  { %7 = vsyncpa [#allocation3], 0  ;;  %s144_s0 = inlined_call_operand.hbm [shape: f32[4,128], index: 0, kind: input, shape index: {}]   ;;  %s145_s1 = inlined_call_operand.vmem [shape: f32[1,128], index: 1, kind: input, shape index: {}]   ;;  %s146_s2 = inlined_call_operand.hbm [shape: f32[4,128], index: 2, kind: output, shape index: {}]  }
   0x1   :  { %8 = vsyncpa [#allocation4], 0  ;;  %s100_s9 = smov [#allocation2]   ;;  %s52_s13 = scalar_lea.hbm %s144_s0, 64 }
   0x2   :  { %s15_s10 = sshll.u32 %s100_s9, 4  ;;  %p53_p0 = scmp.ne.s32.totalorder %s144_s0, %s52_s13  ;;  %s16_s10 = int_to_ptr.vmem [resolvable:$true] %s15_s10 }
   0x3   :  { %p56_p1 = scmp.lt.u32.totalorder %s52_s13, %s144_s0 }
   0x5   :  { %p58_p2 = pnand %p56_p1, %p53_p0 }
   0x7   :  { %61 = shalt.err (!%p58_p2)
}
   0x8   :  { %s62_s18 = scalar_lea.vmem %s16_s10, 64  ;;  %p67_p4 = scmp.lt.s32.totalorder %s16_s10, %s16_s10 }
   0x9   :  { %p63_p3 = scmp.ne.s32.totalorder %s16_s10, %s62_s18  ;;  %p68_p5 = scmp.lt.s32.totalorder %s62_s18, %s62_s18 }
   0xb   :  { %p69_p6 = por %p68_p5, %p67_p4 }
   0xd   :  { %p70_p7 = pnand %p69_p6, %p63_p3 }
   0xf   :  { %73 = shalt.err (!%p70_p7)
}
  0x10   :  { %18 = dma.hbm_to_vmem [thread:$0]  %s144_s0, 64, %s16_s10, [#allocation3]  }
  0x11   :  { %96 = dma.done.wait [#allocation3], 64  }
  0x12   :  { %97 = vsyncadd [#allocation3], 4294967232  ;;  %s101_s21 = smov [#allocation5]   ;;  %v24_v0 = vld [vmem:[#allocation2] sm:$0xf] }
  0x13   :  { %s40_s22 = sshll.u32 %s101_s21, 4  ;;  %v49_v1 = vld [vmem:[%s145_s1] ss:$0 sm:$0xff]  ;;  %s41_s22 = int_to_ptr.vmem [resolvable:$true] %s40_s22 }
  0x14   :  { %v32_v2 = vmul.f32 %v49_v1, %v24_v0  ;;  %s74_s25 = scalar_lea.vmem %s41_s22, 64  ;;  %p79_p9 = scmp.lt.s32.totalorder %s41_s22, %s41_s22 }
  0x15   :  { %p75_p8 = scmp.ne.s32.totalorder %s41_s22, %s74_s25  ;;  %p80_p10 = scmp.lt.s32.totalorder %s74_s25, %s74_s25 }
  0x16   :  { %33 = vst [vmem:[#allocation5] sm:$0xf] %v32_v2 }
  0x17   :  { %p81_p11 = por %p80_p10, %p79_p9 }
  0x19   :  { %p82_p12 = pnand %p81_p11, %p75_p8 }
  0x1b   :  { %85 = shalt.err (!%p82_p12)
}
  0x1c   :  { %s86_s27 = scalar_lea.hbm %s146_s2, 64 }
  0x1d   :  { %p87_p13 = scmp.ne.s32.totalorder %s146_s2, %s86_s27  ;;  %p90_p0 = scmp.lt.u32.totalorder %s86_s27, %s146_s2 }
  0x1f   :  { %p92_p1 = pnand %p90_p0, %p87_p13 }
  0x21   :  { %95 = shalt.err (!%p92_p1)
}
  0x22   :  { %43 = dma.vmem_to_hbm [thread:$0]  %s41_s22, 64, %s146_s2, [#allocation4]  }
  0x23   :  { %98 = dma.done.wait [#allocation4], 64  }
  0x24   :  { %99 = vsyncadd [#allocation4], 4294967232 }
  0x25   :  { %47 = vsyncpa [#allocation3], 1 }
  0x26   :  { %48 = vsyncpa [#allocation4], 1 }

</bundles_post_ra>
